<compile_context>
chip_gen: v7x
topology: tpu7x:2x2x1
jax: 0.10.0
libtpu: 0.0.40
codegen_flags: <defaults>
</compile_context>

<pallas_src>
import jax
import jax.numpy as jnp
from jax.experimental import pallas as pl
from jax.experimental.pallas import tpu as pltpu


def _round_up(n, m):
    return (n + m - 1) // m * m


def _pad2(a, rows, cols):
    """Zero-pad a 2-D array up to (rows, cols). No-op if already that shape."""
    if a.shape == (rows, cols):
        return a
    return jnp.zeros((rows, cols), a.dtype).at[:a.shape[0], :a.shape[1]].set(a)


def actor_kernel(x_ref,
                 w1_ref, b1_ref,
                 w2_ref, b2_ref,
                 w3_ref, b3_ref,
                 w4_ref, b4_ref,
                 o_ref):
    """One batch tile per grid step; all four layers fused, weights VMEM-resident."""

    def dense(h, w_ref, b_ref):
        # Cast only the MXU operands (w may be bf16); accumulate in f32, keep the
        # bias-add / ReLU in f32 so v5e's f32-only VPU path stays convert-free.
        return jnp.dot(h.astype(w_ref.dtype), w_ref[...],
                       preferred_element_type=jnp.float32) + b_ref[...]

    h = jnp.maximum(dense(x_ref[...], w1_ref, b1_ref), 0.0)   # (tb, Hp)
    h = jnp.maximum(dense(h, w2_ref, b2_ref), 0.0)            # (tb, H2p)
    h = jnp.maximum(dense(h, w3_ref, b3_ref), 0.0)            # (tb, Hp)
    logits = dense(h, w4_ref, b4_ref)                         # (tb, out_pad)

    # sigmoid(x) * 2 - 1 == tanh(x / 2): single EUP transcendental, stable for any x.
    o_ref[...] = jnp.tanh(logits * 0.5)


def _default_min_tiles():
    # v7x chips have 2 TensorCores; split the (parallel) batch grid so both get work.
    try:
        kind = jax.devices()[0].device_kind.lower()
        if "v7" in kind:
            return 2
    except Exception:
        pass
    return 1


def actor_forward(x, params, *, tb_max=512, dot_dtype=None, min_tiles=None):
    """x: (B, num_inputs) f32. params: list of (W, b) with W in (in, out) layout,
    b in (1, out) layout. dot_dtype: optional MXU operand dtype (e.g. jnp.bfloat16
    on v6e/v7x); None keeps the params' dtype."""
    (w1, b1), (w2, b2), (w3, b3), (w4, b4) = params
    batch, num_inputs = x.shape
    num_outputs = w4.shape[1]
    if min_tiles is None:
        min_tiles = _default_min_tiles()

    # --- lane-dense padding: every feature dim up to a multiple of 128 ---------------
    h1 = w1.shape[1]          # H
    h2 = w2.shape[1]          # 2H
    Hp = _round_up(max(h1, 128), 128)
    H2p = _round_up(max(h2, 128), 128)
    out_pad = _round_up(max(num_outputs, 128), 128)

    wdt = dot_dtype if dot_dtype is not None else w1.dtype
    w1p = _pad2(w1.astype(wdt), num_inputs, Hp)
    w2p = _pad2(w2.astype(wdt), Hp, H2p)
    w3p = _pad2(w3.astype(wdt), H2p, Hp)
    w4p = _pad2(w4.astype(wdt), Hp, out_pad)
    b1p = _pad2(b1, 1, Hp)
    b2p = _pad2(b2, 1, H2p)
    b3p = _pad2(b3, 1, Hp)
    b4p = _pad2(b4, 1, out_pad)

    # --- balanced batch tiling --------------------------------------------------------
    # Fixed 512-row tiles would pad B=1037 to 1536 (48% wasted work); balancing the
    # tile keeps padding to <8 rows per tile. Big tiles amortize ~0.35us/grid-step.
    n_tiles = pl.cdiv(batch, tb_max) if batch > tb_max else 1
    if min_tiles > 1 and batch >= 128:
        n_tiles = max(n_tiles, min_tiles)      # keep both v7x TensorCores busy
    tb = _round_up(pl.cdiv(batch, n_tiles), 8)
    padded_b = _round_up(batch, tb)
    xp = x if padded_b == batch else _pad2(x, padded_b, num_inputs)
    grid = (padded_b // tb,)

    weights = (w1p, b1p, w2p, b2p, w3p, b3p, w4p, b4p)

    def run(single_buffer_weights):
        # VMEM budget: resident weights (x1 with Buffered(1), x2 otherwise) +
        # double-buffered x/out streams + live f32 intermediates; 2x headroom,
        # capped at v7x's 64 MiB physical VMEM.
        weight_bufs = 1 if single_buffer_weights else 2
        weight_bytes = sum(int(a.size) * a.dtype.itemsize for a in weights)
        stream_bytes = 2 * tb * (num_inputs + out_pad) * 4
        act_bytes = tb * (Hp + H2p + Hp + out_pad) * 4
        budget = weight_bufs * weight_bytes + stream_bytes + 2 * act_bytes + (2 << 20)
        vmem_limit = int(min(max(2 * budget, 32 << 20), 64 << 20))

        def resident(a):
            # Whole-array block whose index never changes -> VMEM-resident across grid.
            if single_buffer_weights:
                return pl.BlockSpec(a.shape, lambda i: (0, 0),
                                    pipeline_mode=pl.Buffered(1))
            return pl.BlockSpec(a.shape, lambda i: (0, 0))

        return pl.pallas_call(
            actor_kernel,
            out_shape=jax.ShapeDtypeStruct((padded_b, out_pad), jnp.float32),
            grid=grid,
            in_specs=[pl.BlockSpec((tb, num_inputs), lambda i: (i, 0))]
                     + [resident(a) for a in weights],
            out_specs=pl.BlockSpec((tb, out_pad), lambda i: (i, 0)),
            compiler_params=pltpu.CompilerParams(
                # Batch tiles are independent -> shard across both TCs on v7x.
                dimension_semantics=("parallel",),
                vmem_limit_bytes=vmem_limit,
            ),
        )(xp, *weights)

    try:
        # Constant-index weights don't need double buffering: halve resident VMEM.
        out = run(single_buffer_weights=True)
    except Exception:
        # pl.Buffered(1) unsupported on this jax version -> default double buffering.
        out = run(single_buffer_weights=False)

    return out[:batch, :num_outputs]


def init_linear(key, fan_in, fan_out):
    """Deterministic init mimicking torch.nn.Linear default (uniform +-1/sqrt(fan_in)).
    Weight returned in (in, out) layout, bias as (1, out) for 2-D VMEM residency."""
    kw, kb = jax.random.split(key)
    bound = 1.0 / jnp.sqrt(jnp.float32(fan_in))
    w = jax.random.uniform(kw, (fan_in, fan_out), jnp.float32, -bound, bound)
    b = jax.random.uniform(kb, (1, fan_out), jnp.float32, -bound, bound)
    return w, b


def make_actor_params(key, num_inputs, hidden_size, num_outputs):
    dims = [
        (num_inputs, hidden_size),
        (hidden_size, hidden_size * 2),
        (hidden_size * 2, hidden_size),
        (hidden_size, num_outputs),
    ]
    keys = jax.random.split(key, len(dims))
    return [init_linear(k, fi, fo) for k, (fi, fo) in zip(keys, dims)]


def actor_reference(x, params):
    """Pure-JAX reference of the same forward (matches the PyTorch module)."""
    h = x
    for i, (w, b) in enumerate(params):
        h = h @ w + b
        if i < 3:
            h = jnp.maximum(h, 0.0)
    return jax.nn.sigmoid(h) * 2.0 - 1.0


if __name__ == "__main__":
    # LunarLanderContinuous-like sizes: obs dim 8, action dim 2; small hidden for demo.
    batch, num_inputs, hidden_size, num_outputs = 2, 8, 32, 2

    key = jax.random.PRNGKey(0)
    k_x, k_p = jax.random.split(key)

    x = jax.random.normal(k_x, (batch, num_inputs), jnp.float32)
    params = make_actor_params(k_p, num_inputs, hidden_size, num_outputs)

    out = actor_forward(x, params)
    out = jax.block_until_ready(out)

    ref = actor_reference(x, params)
    assert out.shape == (batch, num_outputs)
    assert jnp.allclose(out, ref, atol=1e-5, rtol=1e-5), (out, ref)
    assert bool(jnp.all(out >= -1.0) & jnp.all(out <= 1.0))

    # Multi-tile / balanced-padding path (B=1037 -> 3 tiles of 352, padded to 1056).
    big_b = 1037
    xb = jax.random.normal(jax.random.PRNGKey(1), (big_b, num_inputs), jnp.float32)
    out_b = jax.block_until_ready(actor_forward(xb, params))
    ref_b = actor_reference(xb, params)
    assert out_b.shape == (big_b, num_outputs)
    assert jnp.allclose(out_b, ref_b, atol=1e-5, rtol=1e-5)

    print("KERNEL_OK")
</pallas_src>

<mosaic_0001>
module attributes {stable_mosaic.version = 11 : i64} {
  func.func @actor_kernel(%arg0: i32, %arg1: memref<8x8xf32, #tpu.memory_space<vmem>>, %arg2: memref<8x128xf32, #tpu.memory_space<vmem>>, %arg3: memref<1x128xf32, #tpu.memory_space<vmem>>, %arg4: memref<128x128xf32, #tpu.memory_space<vmem>>, %arg5: memref<1x128xf32, #tpu.memory_space<vmem>>, %arg6: memref<128x128xf32, #tpu.memory_space<vmem>>, %arg7: memref<1x128xf32, #tpu.memory_space<vmem>>, %arg8: memref<128x128xf32, #tpu.memory_space<vmem>>, %arg9: memref<1x128xf32, #tpu.memory_space<vmem>>, %arg10: memref<8x128xf32, #tpu.memory_space<vmem>>) attributes {dimension_semantics = [#tpu.dimension_semantics<parallel>], iteration_bounds = array<i64: 1>, scalar_prefetch = 0 : i64, scratch_operands = 0 : i64, tpu.core_type = #tpu.core_type<tc>, window_params = [{transform_indices = @transform_0, window_bounds = array<i64: 8, 8>}, {pipeline_mode = #tpu.pipeline_mode<synchronous>, transform_indices = @transform_1, window_bounds = array<i64: 8, 128>}, {pipeline_mode = #tpu.pipeline_mode<synchronous>, transform_indices = @transform_2, window_bounds = array<i64: 1, 128>}, {pipeline_mode = #tpu.pipeline_mode<synchronous>, transform_indices = @transform_3, window_bounds = array<i64: 128, 128>}, {pipeline_mode = #tpu.pipeline_mode<synchronous>, transform_indices = @transform_4, window_bounds = array<i64: 1, 128>}, {pipeline_mode = #tpu.pipeline_mode<synchronous>, transform_indices = @transform_5, window_bounds = array<i64: 128, 128>}, {pipeline_mode = #tpu.pipeline_mode<synchronous>, transform_indices = @transform_6, window_bounds = array<i64: 1, 128>}, {pipeline_mode = #tpu.pipeline_mode<synchronous>, transform_indices = @transform_7, window_bounds = array<i64: 128, 128>}, {pipeline_mode = #tpu.pipeline_mode<synchronous>, transform_indices = @transform_8, window_bounds = array<i64: 1, 128>}, {transform_indices = @transform_9, window_bounds = array<i64: 8, 128>}]} {
    %c0 = arith.constant 0 : index
    %c0_0 = arith.constant 0 : index
    %0 = vector.load %arg1[%c0, %c0_0] : memref<8x8xf32, #tpu.memory_space<vmem>>, vector<8x8xf32>
    %c0_1 = arith.constant 0 : index
    %c0_2 = arith.constant 0 : index
    %1 = vector.load %arg2[%c0_1, %c0_2] : memref<8x128xf32, #tpu.memory_space<vmem>>, vector<8x128xf32>
    %cst = arith.constant dense<0.000000e+00> : vector<8x128xf32>
    %2 = tpu.matmul %0, %1, %cst {dimension_numbers = #tpu.dot_dimension_numbers<[1], [0], [0], [1], [0, 0, 1, 1], [], []>} : vector<8x8xf32>, vector<8x128xf32>, vector<8x128xf32> -> vector<8x128xf32>
    %c0_3 = arith.constant 0 : index
    %c0_4 = arith.constant 0 : index
    %3 = vector.load %arg3[%c0_3, %c0_4] : memref<1x128xf32, #tpu.memory_space<vmem>>, vector<1x128xf32>
    %4 = vector.broadcast %3 : vector<1x128xf32> to vector<8x128xf32>
    %5 = arith.addf %2, %4 : vector<8x128xf32>
    %cst_5 = arith.constant 0.000000e+00 : f32
    %6 = vector.broadcast %cst_5 : f32 to vector<8x128xf32>
    %7 = arith.maximumf %5, %6 : vector<8x128xf32>
    %c0_6 = arith.constant 0 : index
    %c0_7 = arith.constant 0 : index
    %8 = vector.load %arg4[%c0_6, %c0_7] : memref<128x128xf32, #tpu.memory_space<vmem>>, vector<128x128xf32>
    %cst_8 = arith.constant dense<0.000000e+00> : vector<8x128xf32>
    %9 = tpu.matmul %7, %8, %cst_8 {dimension_numbers = #tpu.dot_dimension_numbers<[1], [0], [0], [1], [0, 0, 1, 1], [], []>} : vector<8x128xf32>, vector<128x128xf32>, vector<8x128xf32> -> vector<8x128xf32>
    %c0_9 = arith.constant 0 : index
    %c0_10 = arith.constant 0 : index
    %10 = vector.load %arg5[%c0_9, %c0_10] : memref<1x128xf32, #tpu.memory_space<vmem>>, vector<1x128xf32>
    %11 = vector.broadcast %10 : vector<1x128xf32> to vector<8x128xf32>
    %12 = arith.addf %9, %11 : vector<8x128xf32>
    %cst_11 = arith.constant 0.000000e+00 : f32
    %13 = vector.broadcast %cst_11 : f32 to vector<8x128xf32>
    %14 = arith.maximumf %12, %13 : vector<8x128xf32>
    %c0_12 = arith.constant 0 : index
    %c0_13 = arith.constant 0 : index
    %15 = vector.load %arg6[%c0_12, %c0_13] : memref<128x128xf32, #tpu.memory_space<vmem>>, vector<128x128xf32>
    %cst_14 = arith.constant dense<0.000000e+00> : vector<8x128xf32>
    %16 = tpu.matmul %14, %15, %cst_14 {dimension_numbers = #tpu.dot_dimension_numbers<[1], [0], [0], [1], [0, 0, 1, 1], [], []>} : vector<8x128xf32>, vector<128x128xf32>, vector<8x128xf32> -> vector<8x128xf32>
    %c0_15 = arith.constant 0 : index
    %c0_16 = arith.constant 0 : index
    %17 = vector.load %arg7[%c0_15, %c0_16] : memref<1x128xf32, #tpu.memory_space<vmem>>, vector<1x128xf32>
    %18 = vector.broadcast %17 : vector<1x128xf32> to vector<8x128xf32>
    %19 = arith.addf %16, %18 : vector<8x128xf32>
    %cst_17 = arith.constant 0.000000e+00 : f32
    %20 = vector.broadcast %cst_17 : f32 to vector<8x128xf32>
    %21 = arith.maximumf %19, %20 : vector<8x128xf32>
    %c0_18 = arith.constant 0 : index
    %c0_19 = arith.constant 0 : index
    %22 = vector.load %arg8[%c0_18, %c0_19] : memref<128x128xf32, #tpu.memory_space<vmem>>, vector<128x128xf32>
    %cst_20 = arith.constant dense<0.000000e+00> : vector<8x128xf32>
    %23 = tpu.matmul %21, %22, %cst_20 {dimension_numbers = #tpu.dot_dimension_numbers<[1], [0], [0], [1], [0, 0, 1, 1], [], []>} : vector<8x128xf32>, vector<128x128xf32>, vector<8x128xf32> -> vector<8x128xf32>
    %c0_21 = arith.constant 0 : index
    %c0_22 = arith.constant 0 : index
    %24 = vector.load %arg9[%c0_21, %c0_22] : memref<1x128xf32, #tpu.memory_space<vmem>>, vector<1x128xf32>
    %25 = vector.broadcast %24 : vector<1x128xf32> to vector<8x128xf32>
    %26 = arith.addf %23, %25 : vector<8x128xf32>
    %cst_23 = arith.constant 5.000000e-01 : f32
    %27 = vector.broadcast %cst_23 : f32 to vector<8x128xf32>
    %28 = arith.mulf %26, %27 : vector<8x128xf32>
    %29 = math.tanh %28 : vector<8x128xf32>
    %c0_24 = arith.constant 0 : index
    %c0_25 = arith.constant 0 : index
    %30 = vector.load %arg10[%c0_24, %c0_25] : memref<8x128xf32, #tpu.memory_space<vmem>>, vector<8x128xf32>
    tpu.vector_store %arg10[%c0_24, %c0_25], %29 {strides = array<i32>} : memref<8x128xf32, #tpu.memory_space<vmem>>, vector<8x128xf32>,
    return
  }
  func.func @transform_0(%arg0: i32) -> (i32, i32) {
    %c0_i32 = arith.constant 0 : i32
    %c0_i32_0 = arith.constant 0 : i32
    return %arg0, %c0_i32 : i32, i32
  }
  func.func @transform_1(%arg0: i32) -> (i32, i32) {
    %c0_i32 = arith.constant 0 : i32
    %c0_i32_0 = arith.constant 0 : i32
    %c0_i32_1 = arith.constant 0 : i32
    return %c0_i32, %c0_i32_0 : i32, i32
  }
  func.func @transform_2(%arg0: i32) -> (i32, i32) {
    %c0_i32 = arith.constant 0 : i32
    %c0_i32_0 = arith.constant 0 : i32
    %c0_i32_1 = arith.constant 0 : i32
    return %c0_i32, %c0_i32_0 : i32, i32
  }
  func.func @transform_3(%arg0: i32) -> (i32, i32) {
    %c0_i32 = arith.constant 0 : i32
    %c0_i32_0 = arith.constant 0 : i32
    %c0_i32_1 = arith.constant 0 : i32
    return %c0_i32, %c0_i32_0 : i32, i32
  }
  func.func @transform_4(%arg0: i32) -> (i32, i32) {
    %c0_i32 = arith.constant 0 : i32
    %c0_i32_0 = arith.constant 0 : i32
    %c0_i32_1 = arith.constant 0 : i32
    return %c0_i32, %c0_i32_0 : i32, i32
  }
  func.func @transform_5(%arg0: i32) -> (i32, i32) {
    %c0_i32 = arith.constant 0 : i32
    %c0_i32_0 = arith.constant 0 : i32
    %c0_i32_1 = arith.constant 0 : i32
    return %c0_i32, %c0_i32_0 : i32, i32
  }
  func.func @transform_6(%arg0: i32) -> (i32, i32) {
    %c0_i32 = arith.constant 0 : i32
    %c0_i32_0 = arith.constant 0 : i32
    %c0_i32_1 = arith.constant 0 : i32
    return %c0_i32, %c0_i32_0 : i32, i32
  }
  func.func @transform_7(%arg0: i32) -> (i32, i32) {
    %c0_i32 = arith.constant 0 : i32
    %c0_i32_0 = arith.constant 0 : i32
    %c0_i32_1 = arith.constant 0 : i32
    return %c0_i32, %c0_i32_0 : i32, i32
  }
  func.func @transform_8(%arg0: i32) -> (i32, i32) {
    %c0_i32 = arith.constant 0 : i32
    %c0_i32_0 = arith.constant 0 : i32
    %c0_i32_1 = arith.constant 0 : i32
    return %c0_i32, %c0_i32_0 : i32, i32
  }
  func.func @transform_9(%arg0: i32) -> (i32, i32) {
    %c0_i32 = arith.constant 0 : i32
    %c0_i32_0 = arith.constant 0 : i32
    return %arg0, %c0_i32 : i32, i32
  }
}

module attributes {stable_mosaic.version = 11 : i64} {
  func.func @actor_kernel(%arg0: i32, %arg1: memref<8x8xf32, #tpu.memory_space<vmem>>, %arg2: memref<8x128xf32, #tpu.memory_space<vmem>>, %arg3: memref<1x128xf32, #tpu.memory_space<vmem>>, %arg4: memref<128x128xf32, #tpu.memory_space<vmem>>, %arg5: memref<1x128xf32, #tpu.memory_space<vmem>>, %arg6: memref<128x128xf32, #tpu.memory_space<vmem>>, %arg7: memref<1x128xf32, #tpu.memory_space<vmem>>, %arg8: memref<128x128xf32, #tpu.memory_space<vmem>>, %arg9: memref<1x128xf32, #tpu.memory_space<vmem>>, %arg10: memref<8x128xf32, #tpu.memory_space<vmem>>) attributes {dimension_semantics = [#tpu.dimension_semantics<parallel>], iteration_bounds = array<i64: 1>, scalar_prefetch = 0 : i64, scratch_operands = 0 : i64, tpu.core_type = #tpu.core_type<tc>, window_params = [{transform_indices = @transform_0, window_bounds = array<i64: 8, 8>}, {pipeline_mode = #tpu.pipeline_mode<synchronous>, transform_indices = @transform_1, window_bounds = array<i64: 8, 128>}, {pipeline_mode = #tpu.pipeline_mode<synchronous>, transform_indices = @transform_2, window_bounds = array<i64: 1, 128>}, {pipeline_mode = #tpu.pipeline_mode<synchronous>, transform_indices = @transform_3, window_bounds = array<i64: 128, 128>}, {pipeline_mode = #tpu.pipeline_mode<synchronous>, transform_indices = @transform_4, window_bounds = array<i64: 1, 128>}, {pipeline_mode = #tpu.pipeline_mode<synchronous>, transform_indices = @transform_5, window_bounds = array<i64: 128, 128>}, {pipeline_mode = #tpu.pipeline_mode<synchronous>, transform_indices = @transform_6, window_bounds = array<i64: 1, 128>}, {pipeline_mode = #tpu.pipeline_mode<synchronous>, transform_indices = @transform_7, window_bounds = array<i64: 128, 128>}, {pipeline_mode = #tpu.pipeline_mode<synchronous>, transform_indices = @transform_8, window_bounds = array<i64: 1, 128>}, {transform_indices = @transform_9, window_bounds = array<i64: 8, 128>}]} {
    %c0 = arith.constant 0 : index
    %c0_0 = arith.constant 0 : index
    %0 = vector.load %arg1[%c0, %c0_0] : memref<8x8xf32, #tpu.memory_space<vmem>>, vector<8x8xf32>
    %c0_1 = arith.constant 0 : index
    %c0_2 = arith.constant 0 : index
    %1 = vector.load %arg2[%c0_1, %c0_2] : memref<8x128xf32, #tpu.memory_space<vmem>>, vector<8x128xf32>
    %cst = arith.constant dense<0.000000e+00> : vector<8x128xf32>
    %2 = tpu.matmul %0, %1, %cst {dimension_numbers = #tpu.dot_dimension_numbers<[1], [0], [0], [1], [0, 0, 1, 1], [], []>} : vector<8x8xf32>, vector<8x128xf32>, vector<8x128xf32> -> vector<8x128xf32>
    %c0_3 = arith.constant 0 : index
    %c0_4 = arith.constant 0 : index
    %3 = vector.load %arg3[%c0_3, %c0_4] : memref<1x128xf32, #tpu.memory_space<vmem>>, vector<1x128xf32>
    %4 = vector.broadcast %3 : vector<1x128xf32> to vector<8x128xf32>
    %5 = arith.addf %2, %4 : vector<8x128xf32>
    %cst_5 = arith.constant 0.000000e+00 : f32
    %6 = vector.broadcast %cst_5 : f32 to vector<8x128xf32>
    %7 = arith.maximumf %5, %6 : vector<8x128xf32>
    %c0_6 = arith.constant 0 : index
    %c0_7 = arith.constant 0 : index
    %8 = vector.load %arg4[%c0_6, %c0_7] : memref<128x128xf32, #tpu.memory_space<vmem>>, vector<128x128xf32>
    %cst_8 = arith.constant dense<0.000000e+00> : vector<8x128xf32>
    %9 = tpu.matmul %7, %8, %cst_8 {dimension_numbers = #tpu.dot_dimension_numbers<[1], [0], [0], [1], [0, 0, 1, 1], [], []>} : vector<8x128xf32>, vector<128x128xf32>, vector<8x128xf32> -> vector<8x128xf32>
    %c0_9 = arith.constant 0 : index
    %c0_10 = arith.constant 0 : index
    %10 = vector.load %arg5[%c0_9, %c0_10] : memref<1x128xf32, #tpu.memory_space<vmem>>, vector<1x128xf32>
    %11 = vector.broadcast %10 : vector<1x128xf32> to vector<8x128xf32>
    %12 = arith.addf %9, %11 : vector<8x128xf32>
    %cst_11 = arith.constant 0.000000e+00 : f32
    %13 = vector.broadcast %cst_11 : f32 to vector<8x128xf32>
    %14 = arith.maximumf %12, %13 : vector<8x128xf32>
    %c0_12 = arith.constant 0 : index
    %c0_13 = arith.constant 0 : index
    %15 = vector.load %arg6[%c0_12, %c0_13] : memref<128x128xf32, #tpu.memory_space<vmem>>, vector<128x128xf32>
    %cst_14 = arith.constant dense<0.000000e+00> : vector<8x128xf32>
    %16 = tpu.matmul %14, %15, %cst_14 {dimension_numbers = #tpu.dot_dimension_numbers<[1], [0], [0], [1], [0, 0, 1, 1], [], []>} : vector<8x128xf32>, vector<128x128xf32>, vector<8x128xf32> -> vector<8x128xf32>
    %c0_15 = arith.constant 0 : index
    %c0_16 = arith.constant 0 : index
    %17 = vector.load %arg7[%c0_15, %c0_16] : memref<1x128xf32, #tpu.memory_space<vmem>>, vector<1x128xf32>
    %18 = vector.broadcast %17 : vector<1x128xf32> to vector<8x128xf32>
    %19 = arith.addf %16, %18 : vector<8x128xf32>
    %cst_17 = arith.constant 0.000000e+00 : f32
    %20 = vector.broadcast %cst_17 : f32 to vector<8x128xf32>
    %21 = arith.maximumf %19, %20 : vector<8x128xf32>
    %c0_18 = arith.constant 0 : index
    %c0_19 = arith.constant 0 : index
    %22 = vector.load %arg8[%c0_18, %c0_19] : memref<128x128xf32, #tpu.memory_space<vmem>>, vector<128x128xf32>
    %cst_20 = arith.constant dense<0.000000e+00> : vector<8x128xf32>
    %23 = tpu.matmul %21, %22, %cst_20 {dimension_numbers = #tpu.dot_dimension_numbers<[1], [0], [0], [1], [0, 0, 1, 1], [], []>} : vector<8x128xf32>, vector<128x128xf32>, vector<8x128xf32> -> vector<8x128xf32>
    %c0_21 = arith.constant 0 : index
    %c0_22 = arith.constant 0 : index
    %24 = vector.load %arg9[%c0_21, %c0_22] : memref<1x128xf32, #tpu.memory_space<vmem>>, vector<1x128xf32>
    %25 = vector.broadcast %24 : vector<1x128xf32> to vector<8x128xf32>
    %26 = arith.addf %23, %25 : vector<8x128xf32>
    %cst_23 = arith.constant 5.000000e-01 : f32
    %27 = vector.broadcast %cst_23 : f32 to vector<8x128xf32>
    %28 = arith.mulf %26, %27 : vector<8x128xf32>
    %29 = math.tanh %28 : vector<8x128xf32>
    %c0_24 = arith.constant 0 : index
    %c0_25 = arith.constant 0 : index
    %30 = vector.load %arg10[%c0_24, %c0_25] : memref<8x128xf32, #tpu.memory_space<vmem>>, vector<8x128xf32>
    tpu.vector_store %arg10[%c0_24, %c0_25], %29 {strides = array<i32>} : memref<8x128xf32, #tpu.memory_space<vmem>>, vector<8x128xf32>,
    return
  }
  func.func @transform_0(%arg0: i32) -> (i32, i32) {
    %c0_i32 = arith.constant 0 : i32
    %c0_i32_0 = arith.constant 0 : i32
    return %arg0, %c0_i32 : i32, i32
  }
  func.func @transform_1(%arg0: i32) -> (i32, i32) {
    %c0_i32 = arith.constant 0 : i32
    %c0_i32_0 = arith.constant 0 : i32
    %c0_i32_1 = arith.constant 0 : i32
    return %c0_i32, %c0_i32_0 : i32, i32
  }
  func.func @transform_2(%arg0: i32) -> (i32, i32) {
    %c0_i32 = arith.constant 0 : i32
    %c0_i32_0 = arith.constant 0 : i32
    %c0_i32_1 = arith.constant 0 : i32
    return %c0_i32, %c0_i32_0 : i32, i32
  }
  func.func @transform_3(%arg0: i32) -> (i32, i32) {
    %c0_i32 = arith.constant 0 : i32
    %c0_i32_0 = arith.constant 0 : i32
    %c0_i32_1 = arith.constant 0 : i32
    return %c0_i32, %c0_i32_0 : i32, i32
  }
  func.func @transform_4(%arg0: i32) -> (i32, i32) {
    %c0_i32 = arith.constant 0 : i32
    %c0_i32_0 = arith.constant 0 : i32
    %c0_i32_1 = arith.constant 0 : i32
    return %c0_i32, %c0_i32_0 : i32, i32
  }
  func.func @transform_5(%arg0: i32) -> (i32, i32) {
    %c0_i32 = arith.constant 0 : i32
    %c0_i32_0 = arith.constant 0 : i32
    %c0_i32_1 = arith.constant 0 : i32
    return %c0_i32, %c0_i32_0 : i32, i32
  }
  func.func @transform_6(%arg0: i32) -> (i32, i32) {
    %c0_i32 = arith.constant 0 : i32
    %c0_i32_0 = arith.constant 0 : i32
    %c0_i32_1 = arith.constant 0 : i32
    return %c0_i32, %c0_i32_0 : i32, i32
  }
  func.func @transform_7(%arg0: i32) -> (i32, i32) {
    %c0_i32 = arith.constant 0 : i32
    %c0_i32_0 = arith.constant 0 : i32
    %c0_i32_1 = arith.constant 0 : i32
    return %c0_i32, %c0_i32_0 : i32, i32
  }
  func.func @transform_8(%arg0: i32) -> (i32, i32) {
    %c0_i32 = arith.constant 0 : i32
    %c0_i32_0 = arith.constant 0 : i32
    %c0_i32_1 = arith.constant 0 : i32
    return %c0_i32, %c0_i32_0 : i32, i32
  }
  func.func @transform_9(%arg0: i32) -> (i32, i32) {
    %c0_i32 = arith.constant 0 : i32
    %c0_i32_0 = arith.constant 0 : i32
    return %arg0, %c0_i32 : i32, i32
  }
}

</mosaic_0001>

<bundles_post_ra>
// kernel: tpu_custom_call.1
= control target key start
LH: loop header
LB: loop body
LE: loop exit
PB: predicated region body
PF: predicated region fallthrough
CT: control target
= control target key end

     0   :  { %14 = vsyncpa [#allocation3], 0  ;;  %s1062_s0 = inlined_call_operand.hbm [shape: f32[8,8], index: 0, kind: input, shape index: {}]   ;;  %s1063_s1 = inlined_call_operand.hbm [shape: f32[8,128], index: 1, kind: input, shape index: {}]   ;;  %s1064_s2 = inlined_call_operand.vmem [shape: f32[1,128], index: 2, kind: input, shape index: {}]   ;;  %s1065_s3 = inlined_call_operand.hbm [shape: f32[128,128], index: 3, kind: input, shape index: {}]   ;;  %s1066_s4 = inlined_call_operand.vmem [shape: f32[1,128], index: 4, kind: input, shape index: {}]   ;;  %s1067_s5 = inlined_call_operand.hbm [shape: f32[128,128], index: 5, kind: input, shape index: {}]   ;;  %s1068_s6 = inlined_call_operand.vmem [shape: f32[1,128], index: 6, kind: input, shape index: {}]   ;;  %s1069_s7 = inlined_call_operand.hbm [shape: f32[128,128], index: 7, kind: input, shape index: {}]   ;;  %s1070_s8 = inlined_call_operand.vmem [shape: f32[1,128], index: 8, kind: input, shape index: {}]   ;;  %s1071_s9 = inlined_call_operand.hbm [shape: f32[8,128], index: 9, kind: output, shape index: {}]  }
   0x1   :  { %15 = vsyncpa [#allocation6], 0 }
   0x2   :  { %16 = vsyncpa [#allocation9], 0 }
   0x3   :  { %17 = vsyncpa [#allocation4], 0  ;;  %s875_s30 = smov [#allocation5]   ;;  %s735_s13 = scalar_lea.hbm %s1063_s1, 128 }
   0x4   :  { %s34_s10 = sshll.u32 %s875_s30, 4  ;;  %p736_p0 = scmp.ne.s32.totalorder %s1063_s1, %s735_s13  ;;  %s35_s10 = int_to_ptr.vmem [resolvable:$true] %s34_s10 }
   0x5   :  { %p739_p1 = scmp.lt.u32.totalorder %s735_s13, %s1063_s1 }
   0x7   :  { %p741_p2 = pnand %p739_p1, %p736_p0 }
   0x9   :  { %744 = shalt.err (!%p741_p2)
}
   0xa   :  { %s745_s18 = scalar_lea.vmem %s35_s10, 128  ;;  %p750_p4 = scmp.lt.s32.totalorder %s35_s10, %s35_s10 }
   0xb   :  { %p746_p3 = scmp.ne.s32.totalorder %s35_s10, %s745_s18  ;;  %p751_p5 = scmp.lt.s32.totalorder %s745_s18, %s745_s18 }
   0xd   :  { %p752_p6 = por %p751_p5, %p750_p4 }
   0xf   :  { %p753_p7 = pnand %p752_p6, %p746_p3 }
  0x11   :  { %756 = shalt.err (!%p753_p7)
}
  0x12   :  { %37 = dma.hbm_to_vmem [thread:$0]  %s1063_s1, 128, %s35_s10, [#allocation6]  }
  0x13   :  { %s876_s21 = smov [#allocation8]   ;;  %s877_s23 = smov [#allocation2]  }
  0x14   :  { %s59_s22 = sshll.u32 %s876_s21, 4  ;;  %s24_s24 = sshll.u32 %s877_s23, 4  ;;  %s60_s22 = int_to_ptr.vmem [resolvable:$true] %s59_s22  ;;  %s25_s24 = int_to_ptr.vmem [resolvable:$true] %s24_s24 }
  0x15   :  { %s757_s27 = scalar_lea.hbm %s1067_s5, 2048 }
  0x16   :  { %p758_p8 = scmp.ne.s32.totalorder %s1067_s5, %s757_s27  ;;  %p761_p9 = scmp.lt.u32.totalorder %s757_s27, %s1067_s5 }
  0x18   :  { %p763_p10 = pnand %p761_p9, %p758_p8 }
  0x1a   :  { %766 = shalt.err (!%p763_p10)
}
  0x1b   :  { %s767_s1 = scalar_lea.vmem %s60_s22, 2048  ;;  %p772_p12 = scmp.lt.s32.totalorder %s60_s22, %s60_s22 }
  0x1c   :  { %p768_p11 = scmp.ne.s32.totalorder %s60_s22, %s767_s1  ;;  %p773_p13 = scmp.lt.s32.totalorder %s767_s1, %s767_s1 }
  0x1e   :  { %p774_p0 = por %p773_p13, %p772_p12 }
  0x20   :  { %p775_p1 = pnand %p774_p0, %p768_p11 }
  0x22   :  { %778 = shalt.err (!%p775_p1)
}
  0x23   :  { %s878_s10 = smov 128   ;;  %s879_s12 = smov 8  }
  0x24   :  { %65 = dma.hbm_to_vmem [thread:$0]  %s1067_s5, 2048, %s60_s22, [#allocation9], %s878_s10, %s878_s10, %s879_s12  }
  0x25   :  { %s779_s17 = scalar_lea.hbm %s1062_s0, 128 }
  0x26   :  { %p780_p2 = scmp.ne.s32.totalorder %s1062_s0, %s779_s17  ;;  %p783_p3 = scmp.lt.u32.totalorder %s779_s17, %s1062_s0 }
  0x28   :  { %p785_p4 = pnand %p783_p3, %p780_p2 }
  0x2a   :  { %788 = shalt.err (!%p785_p4)
}
  0x2b   :  { %s789_s23 = scalar_lea.vmem %s25_s24, 128  ;;  %p794_p6 = scmp.lt.s32.totalorder %s25_s24, %s25_s24 }
  0x2c   :  { %p790_p5 = scmp.ne.s32.totalorder %s25_s24, %s789_s23  ;;  %p795_p7 = scmp.lt.s32.totalorder %s789_s23, %s789_s23 }
  0x2e   :  { %p796_p8 = por %p795_p7, %p794_p6 }
  0x30   :  { %p797_p9 = pnand %p796_p8, %p790_p5 }
  0x32   :  { %800 = shalt.err (!%p797_p9)
}
  0x33   :  { %27 = dma.hbm_to_vmem [thread:$0]  %s1062_s0, 128, %s25_s24, [#allocation3]  }
  0x34   :  { %s880_s25 = smov [#allocation7]   ;;  %s881_s27 = smov [#allocation10]  }
  0x35   :  { %s45_s26 = sshll.u32 %s880_s25, 4  ;;  %s73_s28 = sshll.u32 %s881_s27, 4  ;;  %s46_s26 = int_to_ptr.vmem [resolvable:$true] %s45_s26  ;;  %s74_s28 = int_to_ptr.vmem [resolvable:$true] %s73_s28 }
  0x36   :  { %s801_s11 = scalar_lea.hbm %s1065_s3, 2048 }
  0x37   :  { %p802_p10 = scmp.ne.s32.totalorder %s1065_s3, %s801_s11  ;;  %p805_p11 = scmp.lt.u32.totalorder %s801_s11, %s1065_s3 }
  0x39   :  { %p807_p12 = pnand %p805_p11, %p802_p10 }
  0x3b   :  { %810 = shalt.err (!%p807_p12)
}
  0x3c   :  { %s811_s0 = scalar_lea.vmem %s46_s26, 2048  ;;  %p816_p0 = scmp.lt.s32.totalorder %s46_s26, %s46_s26 }
  0x3d   :  { %p812_p13 = scmp.ne.s32.totalorder %s46_s26, %s811_s0  ;;  %p817_p1 = scmp.lt.s32.totalorder %s811_s0, %s811_s0 }
  0x3f   :  { %p818_p2 = por %p817_p1, %p816_p0 }
  0x41   :  { %p819_p3 = pnand %p818_p2, %p812_p13 }
  0x43   :  { %822 = shalt.err (!%p819_p3)
}
  0x44   :  { %51 = dma.hbm_to_vmem [thread:$0]  %s1065_s3, 2048, %s46_s26, [#allocation6], %s878_s10, %s878_s10, %s879_s12  }
  0x45   :  { %s823_s19 = scalar_lea.hbm %s1069_s7, 2048 }
  0x46   :  { %p824_p4 = scmp.ne.s32.totalorder %s1069_s7, %s823_s19  ;;  %p827_p5 = scmp.lt.u32.totalorder %s823_s19, %s1069_s7 }
  0x48   :  { %p829_p6 = pnand %p827_p5, %p824_p4 }
  0x4a   :  { %832 = shalt.err (!%p829_p6)
}
  0x4b   :  { %s833_s22 = scalar_lea.vmem %s74_s28, 2048  ;;  %p838_p8 = scmp.lt.s32.totalorder %s74_s28, %s74_s28 }
  0x4c   :  { %p834_p7 = scmp.ne.s32.totalorder %s74_s28, %s833_s22  ;;  %p839_p9 = scmp.lt.s32.totalorder %s833_s22, %s833_s22 }
  0x4e   :  { %p840_p10 = por %p839_p9, %p838_p8 }
  0x50   :  { %p841_p11 = pnand %p840_p10, %p834_p7 }
  0x52   :  { %844 = shalt.err (!%p841_p11)
}
  0x53   :  { %79 = dma.hbm_to_vmem [thread:$0]  %s1069_s7, 2048, %s74_s28, [#allocation9], %s878_s10, %s878_s10, %s879_s12  }
  0x54   :  { %867 = dma.done.wait [#allocation3], 128  }
  0x55   :  { %868 = vsyncadd [#allocation3], 4294967168 }
  0x56   :  { %869 = dma.done.wait [#allocation6], 2176  }
  0x57   :  { %870 = vsyncadd [#allocation6], 4294965120 }
  0x58   :  { %871 = dma.done.wait [#allocation9], 4096  }
  0x59   :  { %872 = vsyncadd [#allocation9], 4294963200  ;;  %v882_v0 = vmov 0.0   ;;  %vm883_vm0 = vmmov 0   ;;  %v884_v1 = vmov 0.0|0.0   ;;  %vm106_vm1 = vcmask 64512  }
  0x5a   :  { %540 = vmatprep.subr.mxu0 %v882_v0  ;;  %542 = vmatprep.mubr.msk.f32.mxu0 %vm883_vm0, %v882_v0  ;;  %v98_v2 = vld [vmem:[#allocation5] sm:$0xff]  ;;  %v97_v3 = vld [vmem:[#allocation2] sm:$0xff]  ;;  %v181_v4 = vld [vmem:[#allocation7] sm:$0xff]  ;;  %s885_s29 = smov [#allocation11]  }
  0x5b   :  { %650 = vmatprep.subr.bf16.mxu1 %v884_v1  ;;  %577 = vmatprep.mubr.msk.f32.mxu1 %vm883_vm0, %v882_v0  ;;  %v182_v5 = vld [vmem:[#allocation7 + $0x8] sm:$0xff]  ;;  %v183_v6 = vld [vmem:[#allocation7 + $0x10] sm:$0xff]  ;;  %v184_v7 = vld [vmem:[#allocation7 + $0x18] sm:$0xff]  ;;  %s471_s30 = sshll.u32 %s885_s29, 4  ;;  %s472_s30 = int_to_ptr.vmem [resolvable:$true] %s471_s30 }
  0x5c   :  { %541 = vmatpush3.msra.mxu0 %v98_v2  ;;  %v651_v8 = vpack.c.bf16 %v182_v5, %v181_v4  ;;  %v654_v9 = vpack.c.bf16 %v184_v7, %v183_v6  ;;  %v185_v10 = vld [vmem:[#allocation7 + $0x20] sm:$0xff]  ;;  %v186_v11 = vld [vmem:[#allocation7 + $0x28] sm:$0xff]  ;;  %v187_v13 = vld [vmem:[#allocation7 + $0x30] sm:$0xff]  ;;  %p850_p13 = scmp.lt.s32.totalorder %s472_s30, %s472_s30 }
  0x5d   :  { %543 = vmatmul.mubr.msk.f32.vlgmr.msra.gmra.mrb[0].mxu0 %vm106_vm1, %v97_v3  ;;  %674 = vmatprep.subr.bf16.mxu0 %v884_v1  ;;  %v657_v12 = vpack.c.bf16 %v186_v11, %v185_v10  ;;  %v188_v14 = vld [vmem:[#allocation7 + $0x38] sm:$0xff]  ;;  %v189_v16 = vld [vmem:[#allocation7 + $0x40] sm:$0xff]  ;;  %v190_v17 = vld [vmem:[#allocation7 + $0x48] sm:$0xff] }
  0x5e   :  { %612 = vmatprep.mubr.msk.f32.mxu0 %vm883_vm0, %v882_v0  ;;  %652 = vmatpush3.bf16.msra.mxu1 %v651_v8  ;;  %v660_v15 = vpack.c.bf16 %v188_v14, %v187_v13  ;;  %v663_v18 = vpack.c.bf16 %v190_v17, %v189_v16  ;;  %v191_v19 = vld [vmem:[#allocation7 + $0x50] sm:$0xff]  ;;  %v192_v20 = vld [vmem:[#allocation7 + $0x58] sm:$0xff]  ;;  %v193_v22 = vld [vmem:[#allocation7 + $0x60] sm:$0xff] }
  0x5f   :  { %653 = vmatprep.subr.bf16.mxu1 %v884_v1  ;;  %v666_v21 = vpack.c.bf16 %v192_v20, %v191_v19  ;;  %v194_v23 = vld [vmem:[#allocation7 + $0x68] sm:$0xff]  ;;  %v195_v25 = vld [vmem:[#allocation7 + $0x70] sm:$0xff]  ;;  %v196_v26 = vld [vmem:[#allocation7 + $0x78] sm:$0xff] }
  0x60   :  { %v669_v24 = vpack.c.bf16 %v194_v23, %v193_v22  ;;  %v672_v27 = vpack.c.bf16 %v196_v26, %v195_v25  ;;  %v275_v28 = vld [vmem:[#allocation8] sm:$0xff]  ;;  %v276_v29 = vld [vmem:[#allocation8 + $0x8] sm:$0xff]  ;;  %v277_v30 = vld [vmem:[#allocation8 + $0x10] sm:$0xff] }
  0x61   :  { %v675_v31 = vpack.c.bf16 %v276_v29, %v275_v28  ;;  %v278_v32 = vld [vmem:[#allocation8 + $0x18] sm:$0xff]  ;;  %v279_v34 = vld [vmem:[#allocation8 + $0x20] sm:$0xff]  ;;  %v280_v35 = vld [vmem:[#allocation8 + $0x28] sm:$0xff] }
  0x62   :  { %655 = vmatpush3.bf16.msra.mxu1 %v654_v9  ;;  %v678_v33 = vpack.c.bf16 %v278_v32, %v277_v30  ;;  %v681_v36 = vpack.c.bf16 %v280_v35, %v279_v34  ;;  %v281_v37 = vld [vmem:[#allocation8 + $0x30] sm:$0xff]  ;;  %v282_v38 = vld [vmem:[#allocation8 + $0x38] sm:$0xff]  ;;  %v283_v40 = vld [vmem:[#allocation8 + $0x40] sm:$0xff] }
  0x63   :  { %656 = vmatprep.subr.bf16.mxu1 %v884_v1  ;;  %676 = vmatpush3.bf16.msra.mxu0 %v675_v31  ;;  %v684_v39 = vpack.c.bf16 %v282_v38, %v281_v37  ;;  %v284_v41 = vld [vmem:[#allocation8 + $0x48] sm:$0xff]  ;;  %v285_v43 = vld [vmem:[#allocation8 + $0x50] sm:$0xff]  ;;  %v286_v44 = vld [vmem:[#allocation8 + $0x58] sm:$0xff] }
  0x64   :  { %677 = vmatprep.subr.bf16.mxu0 %v884_v1  ;;  %v687_v42 = vpack.c.bf16 %v284_v41, %v283_v40  ;;  %v690_v45 = vpack.c.bf16 %v286_v44, %v285_v43  ;;  %v287_v46 = vld [vmem:[#allocation8 + $0x60] sm:$0xff]  ;;  %v288_v47 = vld [vmem:[#allocation8 + $0x68] sm:$0xff]  ;;  %v482_v49 = vld [vmem:[%s1064_s2] ss:$0 sm:$0xff] }
  0x65   :  { %v693_v48 = vpack.c.bf16 %v288_v47, %v287_v46  ;;  %v289_v54 = vld [vmem:[#allocation8 + $0x70] sm:$0xff]  ;;  %v290_v55 = vld [vmem:[#allocation8 + $0x78] sm:$0xff]  ;;  %v369_v57 = vld [vmem:[#allocation10] sm:$0xff] }
  0x66   :  { %658 = vmatpush3.bf16.msra.mxu1 %v657_v12  ;;  %v696_v56 = vpack.c.bf16 %v290_v55, %v289_v54  ;;  %v370_v58 = vld [vmem:[#allocation10 + $0x8] sm:$0xff]  ;;  %v371_v59 = vld [vmem:[#allocation10 + $0x10] sm:$0xff]  ;;  %v372_v61 = vld [vmem:[#allocation10 + $0x18] sm:$0xff] }
  0x67   :  { %659 = vmatprep.subr.bf16.mxu1 %v884_v1  ;;  %679 = vmatpush3.bf16.msra.mxu0 %v678_v33  ;;  %v699_v60 = vpack.c.bf16 %v370_v58, %v369_v57  ;;  %v702_v62 = vpack.c.bf16 %v372_v61, %v371_v59  ;;  %v373_v63 = vld [vmem:[#allocation10 + $0x20] sm:$0xff]  ;;  %v374_v2 = vld [vmem:[#allocation10 + $0x28] sm:$0xff]  ;;  %v376_v4 = vld [vmem:[#allocation10 + $0x38] sm:$0xff] }
  0x68   :  { %680 = vmatprep.subr.bf16.mxu0 %v884_v1  ;;  %v705_v3 = vpack.c.bf16 %v374_v2, %v373_v63  ;;  %v377_v6 = vld [vmem:[#allocation10 + $0x40] sm:$0xff]  ;;  %v378_v7 = vld [vmem:[#allocation10 + $0x48] sm:$0xff]  ;;  %v379_v9 = vld [vmem:[#allocation10 + $0x50] sm:$0xff] }
  0x69   :  { %v711_v8 = vpack.c.bf16 %v378_v7, %v377_v6  ;;  %v380_v10 = vld [vmem:[#allocation10 + $0x58] sm:$0xff]  ;;  %v381_v12 = vld [vmem:[#allocation10 + $0x60] sm:$0xff]  ;;  %v382_v13 = vld [vmem:[#allocation10 + $0x68] sm:$0xff] }
  0x6a   :  { %661 = vmatpush3.bf16.msra.mxu1 %v660_v15  ;;  %v714_v11 = vpack.c.bf16 %v380_v10, %v379_v9  ;;  %v717_v14 = vpack.c.bf16 %v382_v13, %v381_v12  ;;  %v484_v15 = vld [vmem:[%s1066_s4] ss:$0 sm:$0xff] }
  0x6b   :  { %662 = vmatprep.subr.bf16.mxu1 %v884_v1  ;;  %682 = vmatpush3.bf16.msra.mxu0 %v681_v36  ;;  %v383_v20 = vld [vmem:[#allocation10 + $0x70] sm:$0xff] }
  0x6c   :  { %683 = vmatprep.subr.bf16.mxu0 %v884_v1  ;;  %v485_v23 = vld [vmem:[%s1068_s6] ss:$0 sm:$0xff]  ;;  %s845_s6 = scalar_lea.vmem %s472_s30, 128 }
  0x6d   :  { %p846_p12 = scmp.ne.s32.totalorder %s472_s30, %s845_s6  ;;  %p851_p0 = scmp.lt.s32.totalorder %s845_s6, %s845_s6 }
  0x6e   :  { %664 = vmatpush3.bf16.msra.mxu1 %v663_v18 }
  0x6f   :  { %665 = vmatprep.subr.bf16.mxu1 %v884_v1  ;;  %685 = vmatpush3.bf16.msra.mxu0 %v684_v39  ;;  %p852_p1 = por %p851_p0, %p850_p13 }
  0x70   :  { %686 = vmatprep.subr.bf16.mxu0 %v884_v1 }
  0x71   :  { %p853_p2 = pnand %p852_p1, %p846_p12 }
  0x72   :  { %667 = vmatpush3.bf16.msra.mxu1 %v666_v21  ;;  %v384_v21 = vld [vmem:[#allocation10 + $0x78] sm:$0xff] }
  0x73   :  { %668 = vmatprep.subr.bf16.mxu1 %v884_v1  ;;  %688 = vmatpush3.bf16.msra.mxu0 %v687_v42  ;;  %v720_v22 = vpack.c.bf16 %v384_v21, %v383_v20 }
  0x74   :  { %689 = vmatprep.subr.bf16.mxu0 %v884_v1 }
  0x76   :  { %670 = vmatpush3.bf16.msra.mxu1 %v669_v24 }
  0x77   :  { %671 = vmatprep.subr.bf16.mxu1 %v884_v1  ;;  %691 = vmatpush3.bf16.msra.mxu0 %v690_v45 }
  0x78   :  { %692 = vmatprep.subr.bf16.mxu0 %v884_v1 }
  0x7a   :  { %673 = vmatpush3.bf16.msra.mxu1 %v672_v27  ;;  %v486_v27 = vld [vmem:[%s1070_s8] ss:$0 sm:$0xff] }
  0x7b   :  { %698 = vmatprep.subr.bf16.mxu1 %v884_v1  ;;  %694 = vmatpush3.bf16.msra.mxu0 %v693_v48 }
  0x7c   :  { %695 = vmatprep.subr.bf16.mxu0 %v884_v1 }
  0x7f   :  { %697 = vmatpush3.bf16.msra.mxu0 %v696_v56 }
 0x130   :  { %v176_v50 = vpop.f32.mrb[0].mxu0 }
 0x131   :  { %v177_v51 = vadd.f32 %v482_v49, %v176_v50  ;;  %v544_v52 = vpop.f32.mrb[1].mxu0 }
 0x133   :  { %v180_v53 = vmax.f32 %v177_v51, 0.0 }
 0x135   :  { %578 = vmatmul.mubr.f32.vlgmr.msra.gmra.mrb[0].mxu1 %v180_v53 }
 0x136   :  { %647 = vmatprep.mubr.msk.f32.mxu1 %vm883_vm0, %v882_v0  ;;  %700 = vmatpush3.bf16.msra.mxu1 %v699_v60  ;;  %v375_v0 = vld [vmem:[#allocation10 + $0x30] sm:$0xff] }
 0x137   :  { %701 = vmatprep.subr.bf16.mxu1 %v884_v1  ;;  %v708_v5 = vpack.c.bf16 %v376_v4, %v375_v0 }
 0x13a   :  { %703 = vmatpush3.bf16.msra.mxu1 %v702_v62 }
 0x13b   :  { %704 = vmatprep.subr.bf16.mxu1 %v884_v1 }
 0x13e   :  { %706 = vmatpush3.bf16.msra.mxu1 %v705_v3 }
 0x13f   :  { %707 = vmatprep.subr.bf16.mxu1 %v884_v1 }
 0x142   :  { %709 = vmatpush3.bf16.msra.mxu1 %v708_v5 }
 0x143   :  { %710 = vmatprep.subr.bf16.mxu1 %v884_v1 }
 0x146   :  { %712 = vmatpush3.bf16.msra.mxu1 %v711_v8 }
 0x147   :  { %713 = vmatprep.subr.bf16.mxu1 %v884_v1 }
 0x14a   :  { %715 = vmatpush3.bf16.msra.mxu1 %v714_v11 }
 0x14b   :  { %716 = vmatprep.subr.bf16.mxu1 %v884_v1 }
 0x14e   :  { %718 = vmatpush3.bf16.msra.mxu1 %v717_v14 }
 0x14f   :  { %719 = vmatprep.subr.bf16.mxu1 %v884_v1 }
 0x152   :  { %721 = vmatpush3.bf16.msra.mxu1 %v720_v22 }
 0x208   :  { %v270_v16 = vpop.f32.mrb[0].mxu1 }
 0x209   :  { %v271_v17 = vadd.f32 %v484_v15, %v270_v16  ;;  %v579_v18 = vpop.f32.mrb[1].mxu1 }
 0x20b   :  { %v274_v19 = vmax.f32 %v271_v17, 0.0 }
 0x20d   :  { %613 = vmatmul.mubr.f32.vlgmr.msra.gmra.mrb[2].mxu0 %v274_v19 }
 0x2e0   :  { %v364_v24 = vpop.f32.mrb[2].mxu0 }
 0x2e1   :  { %v365_v25 = vadd.f32 %v485_v23, %v364_v24  ;;  %v614_v1 = vpop.f32.mrb[3].mxu0 }
 0x2e3   :  { %v368_v26 = vmax.f32 %v365_v25, 0.0 }
 0x2e5   :  { %648 = vmatmul.mubr.f32.vlgmr.msra.gmra.mrb[2].mxu1 %v368_v26 }
 0x3b8   :  { %v458_v28 = vpop.f32.mrb[2].mxu1 }
 0x3b9   :  { %v459_v29 = vadd.f32 %v486_v27, %v458_v28  ;;  %v649_v30 = vpop.f32.mrb[3].mxu1 }
 0x3bb   :  { %v462_v31 = vmul.f32 0.5, %v459_v29 }
 0x3bd   :  { %733 = vtanh.f32 %v462_v31 }
 0x3c7   :  { %v734_v32 = vpop.eup %733 }
 0x3c8   :  { %464 = vst [vmem:[#allocation11] sm:$0xff] %v734_v32 }
 0x3c9   :  { %856 = shalt.err (!%p853_p2)
}
 0x3ca   :  { %s857_s8 = scalar_lea.hbm %s1071_s9, 128 }
 0x3cb   :  { %p858_p3 = scmp.ne.s32.totalorder %s1071_s9, %s857_s8  ;;  %p861_p4 = scmp.lt.u32.totalorder %s857_s8, %s1071_s9 }
 0x3cd   :  { %p863_p5 = pnand %p861_p4, %p858_p3 }
 0x3cf   :  { %866 = shalt.err (!%p863_p5)
}
 0x3d0   :  { %474 = dma.vmem_to_hbm [thread:$0]  %s472_s30, 128, %s1071_s9, [#allocation4]  }
 0x3d1   :  { %873 = dma.done.wait [#allocation4], 128  }
 0x3d2   :  { %874 = vsyncadd [#allocation4], 4294967168 }
 0x3d3   :  { %478 = vsyncpa [#allocation3], 1 }
 0x3d4   :  { %479 = vsyncpa [#allocation6], 1 }
 0x3d5   :  { %480 = vsyncpa [#allocation9], 1 }
 0x3d6   :  { %481 = vsyncpa [#allocation4], 1 }

// kernel: tpu_custom_call.1
= control target key start
LH: loop header
LB: loop body
LE: loop exit
PB: predicated region body
PF: predicated region fallthrough
CT: control target
= control target key end

     0   :  { %14 = vsyncpa [#allocation3], 0  ;;  %s1062_s0 = inlined_call_operand.hbm [shape: f32[8,8], index: 0, kind: input, shape index: {}]   ;;  %s1063_s1 = inlined_call_operand.hbm [shape: f32[8,128], index: 1, kind: input, shape index: {}]   ;;  %s1064_s2 = inlined_call_operand.vmem [shape: f32[1,128], index: 2, kind: input, shape index: {}]   ;;  %s1065_s3 = inlined_call_operand.hbm [shape: f32[128,128], index: 3, kind: input, shape index: {}]   ;;  %s1066_s4 = inlined_call_operand.vmem [shape: f32[1,128], index: 4, kind: input, shape index: {}]   ;;  %s1067_s5 = inlined_call_operand.hbm [shape: f32[128,128], index: 5, kind: input, shape index: {}]   ;;  %s1068_s6 = inlined_call_operand.vmem [shape: f32[1,128], index: 6, kind: input, shape index: {}]   ;;  %s1069_s7 = inlined_call_operand.hbm [shape: f32[128,128], index: 7, kind: input, shape index: {}]   ;;  %s1070_s8 = inlined_call_operand.vmem [shape: f32[1,128], index: 8, kind: input, shape index: {}]   ;;  %s1071_s9 = inlined_call_operand.hbm [shape: f32[8,128], index: 9, kind: output, shape index: {}]  }
   0x1   :  { %15 = vsyncpa [#allocation6], 0 }
   0x2   :  { %16 = vsyncpa [#allocation9], 0 }
   0x3   :  { %17 = vsyncpa [#allocation4], 0  ;;  %s875_s30 = smov [#allocation5]   ;;  %s735_s13 = scalar_lea.hbm %s1063_s1, 128 }
   0x4   :  { %s34_s10 = sshll.u32 %s875_s30, 4  ;;  %p736_p0 = scmp.ne.s32.totalorder %s1063_s1, %s735_s13  ;;  %s35_s10 = int_to_ptr.vmem [resolvable:$true] %s34_s10 }
   0x5   :  { %p739_p1 = scmp.lt.u32.totalorder %s735_s13, %s1063_s1 }
   0x7   :  { %p741_p2 = pnand %p739_p1, %p736_p0 }
   0x9   :  { %744 = shalt.err (!%p741_p2)
}
   0xa   :  { %s745_s18 = scalar_lea.vmem %s35_s10, 128  ;;  %p750_p4 = scmp.lt.s32.totalorder %s35_s10, %s35_s10 }
   0xb   :  { %p746_p3 = scmp.ne.s32.totalorder %s35_s10, %s745_s18  ;;  %p751_p5 = scmp.lt.s32.totalorder %s745_s18, %s745_s18 }
   0xd   :  { %p752_p6 = por %p751_p5, %p750_p4 }
   0xf   :  { %p753_p7 = pnand %p752_p6, %p746_p3 }
  0x11   :  { %756 = shalt.err (!%p753_p7)
}
  0x12   :  { %37 = dma.hbm_to_vmem [thread:$0]  %s1063_s1, 128, %s35_s10, [#allocation6]  }
  0x13   :  { %s876_s21 = smov [#allocation8]   ;;  %s877_s23 = smov [#allocation2]  }
  0x14   :  { %s59_s22 = sshll.u32 %s876_s21, 4  ;;  %s24_s24 = sshll.u32 %s877_s23, 4  ;;  %s60_s22 = int_to_ptr.vmem [resolvable:$true] %s59_s22  ;;  %s25_s24 = int_to_ptr.vmem [resolvable:$true] %s24_s24 }
  0x15   :  { %s757_s27 = scalar_lea.hbm %s1067_s5, 2048 }
  0x16   :  { %p758_p8 = scmp.ne.s32.totalorder %s1067_s5, %s757_s27  ;;  %p761_p9 = scmp.lt.u32.totalorder %s757_s27, %s1067_s5 }
  0x18   :  { %p763_p10 = pnand %p761_p9, %p758_p8 }
  0x1a   :  { %766 = shalt.err (!%p763_p10)
}
  0x1b   :  { %s767_s1 = scalar_lea.vmem %s60_s22, 2048  ;;  %p772_p12 = scmp.lt.s32.totalorder %s60_s22, %s60_s22 }
  0x1c   :  { %p768_p11 = scmp.ne.s32.totalorder %s60_s22, %s767_s1  ;;  %p773_p13 = scmp.lt.s32.totalorder %s767_s1, %s767_s1 }
  0x1e   :  { %p774_p0 = por %p773_p13, %p772_p12 }
  0x20   :  { %p775_p1 = pnand %p774_p0, %p768_p11 }
  0x22   :  { %778 = shalt.err (!%p775_p1)
}
  0x23   :  { %s878_s10 = smov 128   ;;  %s879_s12 = smov 8  }
  0x24   :  { %65 = dma.hbm_to_vmem [thread:$0]  %s1067_s5, 2048, %s60_s22, [#allocation9], %s878_s10, %s878_s10, %s879_s12  }
  0x25   :  { %s779_s17 = scalar_lea.hbm %s1062_s0, 128 }
  0x26   :  { %p780_p2 = scmp.ne.s32.totalorder %s1062_s0, %s779_s17  ;;  %p783_p3 = scmp.lt.u32.totalorder %s779_s17, %s1062_s0 }
  0x28   :  { %p785_p4 = pnand %p783_p3, %p780_p2 }
  0x2a   :  { %788 = shalt.err (!%p785_p4)
}
  0x2b   :  { %s789_s23 = scalar_lea.vmem %s25_s24, 128  ;;  %p794_p6 = scmp.lt.s32.totalorder %s25_s24, %s25_s24 }
  0x2c   :  { %p790_p5 = scmp.ne.s32.totalorder %s25_s24, %s789_s23  ;;  %p795_p7 = scmp.lt.s32.totalorder %s789_s23, %s789_s23 }
  0x2e   :  { %p796_p8 = por %p795_p7, %p794_p6 }
  0x30   :  { %p797_p9 = pnand %p796_p8, %p790_p5 }
  0x32   :  { %800 = shalt.err (!%p797_p9)
}
  0x33   :  { %27 = dma.hbm_to_vmem [thread:$0]  %s1062_s0, 128, %s25_s24, [#allocation3]  }
  0x34   :  { %s880_s25 = smov [#allocation7]   ;;  %s881_s27 = smov [#allocation10]  }
  0x35   :  { %s45_s26 = sshll.u32 %s880_s25, 4  ;;  %s73_s28 = sshll.u32 %s881_s27, 4  ;;  %s46_s26 = int_to_ptr.vmem [resolvable:$true] %s45_s26  ;;  %s74_s28 = int_to_ptr.vmem [resolvable:$true] %s73_s28 }
  0x36   :  { %s801_s11 = scalar_lea.hbm %s1065_s3, 2048 }
  0x37   :  { %p802_p10 = scmp.ne.s32.totalorder %s1065_s3, %s801_s11  ;;  %p805_p11 = scmp.lt.u32.totalorder %s801_s11, %s1065_s3 }
  0x39   :  { %p807_p12 = pnand %p805_p11, %p802_p10 }
  0x3b   :  { %810 = shalt.err (!%p807_p12)
}
  0x3c   :  { %s811_s0 = scalar_lea.vmem %s46_s26, 2048  ;;  %p816_p0 = scmp.lt.s32.totalorder %s46_s26, %s46_s26 }
  0x3d   :  { %p812_p13 = scmp.ne.s32.totalorder %s46_s26, %s811_s0  ;;  %p817_p1 = scmp.lt.s32.totalorder %s811_s0, %s811_s0 }
  0x3f   :  { %p818_p2 = por %p817_p1, %p816_p0 }
  0x41   :  { %p819_p3 = pnand %p818_p2, %p812_p13 }
  0x43   :  { %822 = shalt.err (!%p819_p3)
}
  0x44   :  { %51 = dma.hbm_to_vmem [thread:$0]  %s1065_s3, 2048, %s46_s26, [#allocation6], %s878_s10, %s878_s10, %s879_s12  }
  0x45   :  { %s823_s19 = scalar_lea.hbm %s1069_s7, 2048 }
  0x46   :  { %p824_p4 = scmp.ne.s32.totalorder %s1069_s7, %s823_s19  ;;  %p827_p5 = scmp.lt.u32.totalorder %s823_s19, %s1069_s7 }
  0x48   :  { %p829_p6 = pnand %p827_p5, %p824_p4 }
  0x4a   :  { %832 = shalt.err (!%p829_p6)
}
  0x4b   :  { %s833_s22 = scalar_lea.vmem %s74_s28, 2048  ;;  %p838_p8 = scmp.lt.s32.totalorder %s74_s28, %s74_s28 }
  0x4c   :  { %p834_p7 = scmp.ne.s32.totalorder %s74_s28, %s833_s22  ;;  %p839_p9 = scmp.lt.s32.totalorder %s833_s22, %s833_s22 }
  0x4e   :  { %p840_p10 = por %p839_p9, %p838_p8 }
  0x50   :  { %p841_p11 = pnand %p840_p10, %p834_p7 }
  0x52   :  { %844 = shalt.err (!%p841_p11)
}
  0x53   :  { %79 = dma.hbm_to_vmem [thread:$0]  %s1069_s7, 2048, %s74_s28, [#allocation9], %s878_s10, %s878_s10, %s879_s12  }
  0x54   :  { %867 = dma.done.wait [#allocation3], 128  }
  0x55   :  { %868 = vsyncadd [#allocation3], 4294967168 }
  0x56   :  { %869 = dma.done.wait [#allocation6], 2176  }
  0x57   :  { %870 = vsyncadd [#allocation6], 4294965120 }
  0x58   :  { %871 = dma.done.wait [#allocation9], 4096  }
  0x59   :  { %872 = vsyncadd [#allocation9], 4294963200  ;;  %v882_v0 = vmov 0.0   ;;  %vm883_vm0 = vmmov 0   ;;  %v884_v1 = vmov 0.0|0.0   ;;  %vm106_vm1 = vcmask 64512  }
  0x5a   :  { %540 = vmatprep.subr.mxu0 %v882_v0  ;;  %542 = vmatprep.mubr.msk.f32.mxu0 %vm883_vm0, %v882_v0  ;;  %v98_v2 = vld [vmem:[#allocation5] sm:$0xff]  ;;  %v97_v3 = vld [vmem:[#allocation2] sm:$0xff]  ;;  %v181_v4 = vld [vmem:[#allocation7] sm:$0xff]  ;;  %s885_s29 = smov [#allocation11]  }
  0x5b   :  { %650 = vmatprep.subr.bf16.mxu1 %v884_v1  ;;  %577 = vmatprep.mubr.msk.f32.mxu1 %vm883_vm0, %v882_v0  ;;  %v182_v5 = vld [vmem:[#allocation7 + $0x8] sm:$0xff]  ;;  %v183_v6 = vld [vmem:[#allocation7 + $0x10] sm:$0xff]  ;;  %v184_v7 = vld [vmem:[#allocation7 + $0x18] sm:$0xff]  ;;  %s471_s30 = sshll.u32 %s885_s29, 4  ;;  %s472_s30 = int_to_ptr.vmem [resolvable:$true] %s471_s30 }
  0x5c   :  { %541 = vmatpush3.msra.mxu0 %v98_v2  ;;  %v651_v8 = vpack.c.bf16 %v182_v5, %v181_v4  ;;  %v654_v9 = vpack.c.bf16 %v184_v7, %v183_v6  ;;  %v185_v10 = vld [vmem:[#allocation7 + $0x20] sm:$0xff]  ;;  %v186_v11 = vld [vmem:[#allocation7 + $0x28] sm:$0xff]  ;;  %v187_v13 = vld [vmem:[#allocation7 + $0x30] sm:$0xff]  ;;  %p850_p13 = scmp.lt.s32.totalorder %s472_s30, %s472_s30 }
  0x5d   :  { %543 = vmatmul.mubr.msk.f32.vlgmr.msra.gmra.mrb[0].mxu0 %vm106_vm1, %v97_v3  ;;  %674 = vmatprep.subr.bf16.mxu0 %v884_v1  ;;  %v657_v12 = vpack.c.bf16 %v186_v11, %v185_v10  ;;  %v188_v14 = vld [vmem:[#allocation7 + $0x38] sm:$0xff]  ;;  %v189_v16 = vld [vmem:[#allocation7 + $0x40] sm:$0xff]  ;;  %v190_v17 = vld [vmem:[#allocation7 + $0x48] sm:$0xff] }
  0x5e   :  { %612 = vmatprep.mubr.msk.f32.mxu0 %vm883_vm0, %v882_v0  ;;  %652 = vmatpush3.bf16.msra.mxu1 %v651_v8  ;;  %v660_v15 = vpack.c.bf16 %v188_v14, %v187_v13  ;;  %v663_v18 = vpack.c.bf16 %v190_v17, %v189_v16  ;;  %v191_v19 = vld [vmem:[#allocation7 + $0x50] sm:$0xff]  ;;  %v192_v20 = vld [vmem:[#allocation7 + $0x58] sm:$0xff]  ;;  %v193_v22 = vld [vmem:[#allocation7 + $0x60] sm:$0xff] }
  0x5f   :  { %653 = vmatprep.subr.bf16.mxu1 %v884_v1  ;;  %v666_v21 = vpack.c.bf16 %v192_v20, %v191_v19  ;;  %v194_v23 = vld [vmem:[#allocation7 + $0x68] sm:$0xff]  ;;  %v195_v25 = vld [vmem:[#allocation7 + $0x70] sm:$0xff]  ;;  %v196_v26 = vld [vmem:[#allocation7 + $0x78] sm:$0xff] }
  0x60   :  { %v669_v24 = vpack.c.bf16 %v194_v23, %v193_v22  ;;  %v672_v27 = vpack.c.bf16 %v196_v26, %v195_v25  ;;  %v275_v28 = vld [vmem:[#allocation8] sm:$0xff]  ;;  %v276_v29 = vld [vmem:[#allocation8 + $0x8] sm:$0xff]  ;;  %v277_v30 = vld [vmem:[#allocation8 + $0x10] sm:$0xff] }
  0x61   :  { %v675_v31 = vpack.c.bf16 %v276_v29, %v275_v28  ;;  %v278_v32 = vld [vmem:[#allocation8 + $0x18] sm:$0xff]  ;;  %v279_v34 = vld [vmem:[#allocation8 + $0x20] sm:$0xff]  ;;  %v280_v35 = vld [vmem:[#allocation8 + $0x28] sm:$0xff] }
  0x62   :  { %655 = vmatpush3.bf16.msra.mxu1 %v654_v9  ;;  %v678_v33 = vpack.c.bf16 %v278_v32, %v277_v30  ;;  %v681_v36 = vpack.c.bf16 %v280_v35, %v279_v34  ;;  %v281_v37 = vld [vmem:[#allocation8 + $0x30] sm:$0xff]  ;;  %v282_v38 = vld [vmem:[#allocation8 + $0x38] sm:$0xff]  ;;  %v283_v40 = vld [vmem:[#allocation8 + $0x40] sm:$0xff] }
  0x63   :  { %656 = vmatprep.subr.bf16.mxu1 %v884_v1  ;;  %676 = vmatpush3.bf16.msra.mxu0 %v675_v31  ;;  %v684_v39 = vpack.c.bf16 %v282_v38, %v281_v37  ;;  %v284_v41 = vld [vmem:[#allocation8 + $0x48] sm:$0xff]  ;;  %v285_v43 = vld [vmem:[#allocation8 + $0x50] sm:$0xff]  ;;  %v286_v44 = vld [vmem:[#allocation8 + $0x58] sm:$0xff] }
  0x64   :  { %677 = vmatprep.subr.bf16.mxu0 %v884_v1  ;;  %v687_v42 = vpack.c.bf16 %v284_v41, %v283_v40  ;;  %v690_v45 = vpack.c.bf16 %v286_v44, %v285_v43  ;;  %v287_v46 = vld [vmem:[#allocation8 + $0x60] sm:$0xff]  ;;  %v288_v47 = vld [vmem:[#allocation8 + $0x68] sm:$0xff]  ;;  %v482_v49 = vld [vmem:[%s1064_s2] ss:$0 sm:$0xff] }
  0x65   :  { %v693_v48 = vpack.c.bf16 %v288_v47, %v287_v46  ;;  %v289_v54 = vld [vmem:[#allocation8 + $0x70] sm:$0xff]  ;;  %v290_v55 = vld [vmem:[#allocation8 + $0x78] sm:$0xff]  ;;  %v369_v57 = vld [vmem:[#allocation10] sm:$0xff] }
  0x66   :  { %658 = vmatpush3.bf16.msra.mxu1 %v657_v12  ;;  %v696_v56 = vpack.c.bf16 %v290_v55, %v289_v54  ;;  %v370_v58 = vld [vmem:[#allocation10 + $0x8] sm:$0xff]  ;;  %v371_v59 = vld [vmem:[#allocation10 + $0x10] sm:$0xff]  ;;  %v372_v61 = vld [vmem:[#allocation10 + $0x18] sm:$0xff] }
  0x67   :  { %659 = vmatprep.subr.bf16.mxu1 %v884_v1  ;;  %679 = vmatpush3.bf16.msra.mxu0 %v678_v33  ;;  %v699_v60 = vpack.c.bf16 %v370_v58, %v369_v57  ;;  %v702_v62 = vpack.c.bf16 %v372_v61, %v371_v59  ;;  %v373_v63 = vld [vmem:[#allocation10 + $0x20] sm:$0xff]  ;;  %v374_v2 = vld [vmem:[#allocation10 + $0x28] sm:$0xff]  ;;  %v376_v4 = vld [vmem:[#allocation10 + $0x38] sm:$0xff] }
  0x68   :  { %680 = vmatprep.subr.bf16.mxu0 %v884_v1  ;;  %v705_v3 = vpack.c.bf16 %v374_v2, %v373_v63  ;;  %v377_v6 = vld [vmem:[#allocation10 + $0x40] sm:$0xff]  ;;  %v378_v7 = vld [vmem:[#allocation10 + $0x48] sm:$0xff]  ;;  %v379_v9 = vld [vmem:[#allocation10 + $0x50] sm:$0xff] }
  0x69   :  { %v711_v8 = vpack.c.bf16 %v378_v7, %v377_v6  ;;  %v380_v10 = vld [vmem:[#allocation10 + $0x58] sm:$0xff]  ;;  %v381_v12 = vld [vmem:[#allocation10 + $0x60] sm:$0xff]  ;;  %v382_v13 = vld [vmem:[#allocation10 + $0x68] sm:$0xff] }
  0x6a   :  { %661 = vmatpush3.bf16.msra.mxu1 %v660_v15  ;;  %v714_v11 = vpack.c.bf16 %v380_v10, %v379_v9  ;;  %v717_v14 = vpack.c.bf16 %v382_v13, %v381_v12  ;;  %v484_v15 = vld [vmem:[%s1066_s4] ss:$0 sm:$0xff] }
  0x6b   :  { %662 = vmatprep.subr.bf16.mxu1 %v884_v1  ;;  %682 = vmatpush3.bf16.msra.mxu0 %v681_v36  ;;  %v383_v20 = vld [vmem:[#allocation10 + $0x70] sm:$0xff] }
  0x6c   :  { %683 = vmatprep.subr.bf16.mxu0 %v884_v1  ;;  %v485_v23 = vld [vmem:[%s1068_s6] ss:$0 sm:$0xff]  ;;  %s845_s6 = scalar_lea.vmem %s472_s30, 128 }
  0x6d   :  { %p846_p12 = scmp.ne.s32.totalorder %s472_s30, %s845_s6  ;;  %p851_p0 = scmp.lt.s32.totalorder %s845_s6, %s845_s6 }
  0x6e   :  { %664 = vmatpush3.bf16.msra.mxu1 %v663_v18 }
  0x6f   :  { %665 = vmatprep.subr.bf16.mxu1 %v884_v1  ;;  %685 = vmatpush3.bf16.msra.mxu0 %v684_v39  ;;  %p852_p1 = por %p851_p0, %p850_p13 }
  0x70   :  { %686 = vmatprep.subr.bf16.mxu0 %v884_v1 }
  0x71   :  { %p853_p2 = pnand %p852_p1, %p846_p12 }
  0x72   :  { %667 = vmatpush3.bf16.msra.mxu1 %v666_v21  ;;  %v384_v21 = vld [vmem:[#allocation10 + $0x78] sm:$0xff] }
  0x73   :  { %668 = vmatprep.subr.bf16.mxu1 %v884_v1  ;;  %688 = vmatpush3.bf16.msra.mxu0 %v687_v42  ;;  %v720_v22 = vpack.c.bf16 %v384_v21, %v383_v20 }
  0x74   :  { %689 = vmatprep.subr.bf16.mxu0 %v884_v1 }
  0x76   :  { %670 = vmatpush3.bf16.msra.mxu1 %v669_v24 }
  0x77   :  { %671 = vmatprep.subr.bf16.mxu1 %v884_v1  ;;  %691 = vmatpush3.bf16.msra.mxu0 %v690_v45 }
  0x78   :  { %692 = vmatprep.subr.bf16.mxu0 %v884_v1 }
  0x7a   :  { %673 = vmatpush3.bf16.msra.mxu1 %v672_v27  ;;  %v486_v27 = vld [vmem:[%s1070_s8] ss:$0 sm:$0xff] }
  0x7b   :  { %698 = vmatprep.subr.bf16.mxu1 %v884_v1  ;;  %694 = vmatpush3.bf16.msra.mxu0 %v693_v48 }
  0x7c   :  { %695 = vmatprep.subr.bf16.mxu0 %v884_v1 }
  0x7f   :  { %697 = vmatpush3.bf16.msra.mxu0 %v696_v56 }
 0x130   :  { %v176_v50 = vpop.f32.mrb[0].mxu0 }
 0x131   :  { %v177_v51 = vadd.f32 %v482_v49, %v176_v50  ;;  %v544_v52 = vpop.f32.mrb[1].mxu0 }
 0x133   :  { %v180_v53 = vmax.f32 %v177_v51, 0.0 }
 0x135   :  { %578 = vmatmul.mubr.f32.vlgmr.msra.gmra.mrb[0].mxu1 %v180_v53 }
 0x136   :  { %647 = vmatprep.mubr.msk.f32.mxu1 %vm883_vm0, %v882_v0  ;;  %700 = vmatpush3.bf16.msra.mxu1 %v699_v60  ;;  %v375_v0 = vld [vmem:[#allocation10 + $0x30] sm:$0xff] }
 0x137   :  { %701 = vmatprep.subr.bf16.mxu1 %v884_v1  ;;  %v708_v5 = vpack.c.bf16 %v376_v4, %v375_v0 }
 0x13a   :  { %703 = vmatpush3.bf16.msra.mxu1 %v702_v62 }
 0x13b   :  { %704 = vmatprep.subr.bf16.mxu1 %v884_v1 }
 0x13e   :  { %706 = vmatpush3.bf16.msra.mxu1 %v705_v3 }
 0x13f   :  { %707 = vmatprep.subr.bf16.mxu1 %v884_v1 }
 0x142   :  { %709 = vmatpush3.bf16.msra.mxu1 %v708_v5 }
 0x143   :  { %710 = vmatprep.subr.bf16.mxu1 %v884_v1 }
 0x146   :  { %712 = vmatpush3.bf16.msra.mxu1 %v711_v8 }
 0x147   :  { %713 = vmatprep.subr.bf16.mxu1 %v884_v1 }
 0x14a   :  { %715 = vmatpush3.bf16.msra.mxu1 %v714_v11 }
 0x14b   :  { %716 = vmatprep.subr.bf16.mxu1 %v884_v1 }
 0x14e   :  { %718 = vmatpush3.bf16.msra.mxu1 %v717_v14 }
 0x14f   :  { %719 = vmatprep.subr.bf16.mxu1 %v884_v1 }
 0x152   :  { %721 = vmatpush3.bf16.msra.mxu1 %v720_v22 }
 0x208   :  { %v270_v16 = vpop.f32.mrb[0].mxu1 }
 0x209   :  { %v271_v17 = vadd.f32 %v484_v15, %v270_v16  ;;  %v579_v18 = vpop.f32.mrb[1].mxu1 }
 0x20b   :  { %v274_v19 = vmax.f32 %v271_v17, 0.0 }
 0x20d   :  { %613 = vmatmul.mubr.f32.vlgmr.msra.gmra.mrb[2].mxu0 %v274_v19 }
 0x2e0   :  { %v364_v24 = vpop.f32.mrb[2].mxu0 }
 0x2e1   :  { %v365_v25 = vadd.f32 %v485_v23, %v364_v24  ;;  %v614_v1 = vpop.f32.mrb[3].mxu0 }
 0x2e3   :  { %v368_v26 = vmax.f32 %v365_v25, 0.0 }
 0x2e5   :  { %648 = vmatmul.mubr.f32.vlgmr.msra.gmra.mrb[2].mxu1 %v368_v26 }
 0x3b8   :  { %v458_v28 = vpop.f32.mrb[2].mxu1 }
 0x3b9   :  { %v459_v29 = vadd.f32 %v486_v27, %v458_v28  ;;  %v649_v30 = vpop.f32.mrb[3].mxu1 }
 0x3bb   :  { %v462_v31 = vmul.f32 0.5, %v459_v29 }
 0x3bd   :  { %733 = vtanh.f32 %v462_v31 }
 0x3c7   :  { %v734_v32 = vpop.eup %733 }
 0x3c8   :  { %464 = vst [vmem:[#allocation11] sm:$0xff] %v734_v32 }
 0x3c9   :  { %856 = shalt.err (!%p853_p2)
}
 0x3ca   :  { %s857_s8 = scalar_lea.hbm %s1071_s9, 128 }
 0x3cb   :  { %p858_p3 = scmp.ne.s32.totalorder %s1071_s9, %s857_s8  ;;  %p861_p4 = scmp.lt.u32.totalorder %s857_s8, %s1071_s9 }
 0x3cd   :  { %p863_p5 = pnand %p861_p4, %p858_p3 }
 0x3cf   :  { %866 = shalt.err (!%p863_p5)
}
 0x3d0   :  { %474 = dma.vmem_to_hbm [thread:$0]  %s472_s30, 128, %s1071_s9, [#allocation4]  }
 0x3d1   :  { %873 = dma.done.wait [#allocation4], 128  }
 0x3d2   :  { %874 = vsyncadd [#allocation4], 4294967168 }
 0x3d3   :  { %478 = vsyncpa [#allocation3], 1 }
 0x3d4   :  { %479 = vsyncpa [#allocation6], 1 }
 0x3d5   :  { %480 = vsyncpa [#allocation9], 1 }
 0x3d6   :  { %481 = vsyncpa [#allocation4], 1 }

</bundles_post_ra>
